<compile_context>
chip_gen: v5e
topology: v5e:2x2
jax: 0.10.0
libtpu: 0.0.40
codegen_flags: <defaults>
</compile_context>

<pallas_src>
import jax
import jax.numpy as jnp
from jax.experimental import pallas as pl
from jax.experimental.pallas import tpu as pltpu

C = 64   # fixed by the module: nn.Conv2d(64, 64, kernel_size=1)


def diva_kernel(x_ref, p_ref, inv_ref, pht_ref, pwt_ref,
                whT_ref, bh_ref, wwT_ref, bw_ref, o_ref):
    """One batch block.

    x_ref   : (B, C, S)   S = H*W, lane-dense
    p_ref   : (S, H+W)    0/1 pooling matrix for segment sums, columns [H | W]
    inv_ref : (1, H+W)    [1/W]*H ++ [1/H]*W
    pht_ref : (H, S)      pht[h, s] = 1 iff s // W == h   (broadcast-back)
    pwt_ref : (W, S)      pwt[w, s] = 1 iff s %  W == w
    whT/wwT : (C, C)      conv weights pre-transposed to (C_in, C_out)
    bh/bw   : (1, C)      conv biases
    """
    x = x_ref[...]
    bb, c, s = x.shape
    h = pht_ref.shape[0]
    w = pwt_ref.shape[0]

    # ---- fold batch into the matmul M dim: (B*C, S) -------------------------
    x2d = x.reshape(bb * c, s)
    xx2d = x2d * x2d

    p = p_ref[...]
    sums = jnp.dot(x2d, p, preferred_element_type=jnp.float32)     # (B*C, H+W)
    sqs = jnp.dot(xx2d, p, preferred_element_type=jnp.float32)     # (B*C, H+W)

    # single-pass biased variance, clamped against catastrophic cancellation
    inv = inv_ref[...]
    mean = sums * inv
    var = jnp.maximum(sqs * inv - mean * mean, 0.0)                # (B*C, H+W)

    # ---- 1x1 convs: bring C onto a matrix dim with minormost transposes -----
    var3 = var.reshape(bb, c, h + w)
    var_h = jnp.swapaxes(var3[:, :, :h], 1, 2).reshape(bb * h, c)  # (B*H, C)
    var_w = jnp.swapaxes(var3[:, :, h:], 1, 2).reshape(bb * w, c)  # (B*W, C)

    a_h = jax.nn.sigmoid(
        jnp.dot(var_h, whT_ref[...], preferred_element_type=jnp.float32)
        + bh_ref[...])                                             # (B*H, C)
    a_w = jax.nn.sigmoid(
        jnp.dot(var_w, wwT_ref[...], preferred_element_type=jnp.float32)
        + bw_ref[...])                                             # (B*W, C)

    a_h2d = jnp.swapaxes(a_h.reshape(bb, h, c), 1, 2).reshape(bb * c, h)
    a_w2d = jnp.swapaxes(a_w.reshape(bb, w, c), 1, 2).reshape(bb * c, w)

    # ---- broadcast attention maps back to lane-dense (B*C, S) via MXU -------
    bc_h = jnp.dot(a_h2d, pht_ref[...], preferred_element_type=jnp.float32)
    bc_w = jnp.dot(a_w2d, pwt_ref[...], preferred_element_type=jnp.float32)

    o_ref[...] = (x2d * bc_h * bc_w).reshape(bb, c, s).astype(o_ref.dtype)


def _small_vmem_part():
    """True on 64-MiB-VMEM parts (v7x class, 2 TensorCores)."""
    try:
        info = pltpu.get_tpu_info()
        vmem = int(getattr(info, "vmem_capacity_bytes", 0)) or (64 * 1024 * 1024)
    except Exception:
        vmem = 64 * 1024 * 1024   # conservative fallback (safe everywhere)
    return vmem <= 64 * 1024 * 1024


def _pick_tiling(n, small_vmem, batch_block):
    if batch_block is not None:
        b = max(1, min(int(batch_block), n))
        return b, (32 if small_vmem else 64) * 1024 * 1024
    if small_vmem:
        # v7x: 64 MiB VMEM, 2 TensorCores -> smaller tiles and >=2 grid steps
        # so the ("parallel",) batch axis shards across both cores.
        b = min(16, n)
        if n > 1 and pl.cdiv(n, b) < 2:
            b = max(pl.cdiv(n, 2), 1)
        return b, 32 * 1024 * 1024
    # v5e / v6e: 128 MiB VMEM, single TensorCore, memory-bound -> big tiles.
    return max(1, min(32, n)), 64 * 1024 * 1024


def diva_attention(x, wh, bh, ww, bw, *, batch_block=None):
    n, c, h, w = x.shape
    assert c == C, f"DiVA_attention is fixed to {C} channels, got {c}"
    s = h * w
    dtype = x.dtype

    small_vmem = _small_vmem_part()
    b_blk, vmem_limit = _pick_tiling(n, small_vmem, batch_block)

    x_flat = x.reshape(n, c, s)                        # lane-dense layout
    n_pad = pl.cdiv(n, b_blk) * b_blk
    if n_pad != n:
        x_flat = jnp.pad(x_flat, ((0, n_pad - n), (0, 0), (0, 0)))
    grid = (n_pad // b_blk,)

    # 0/1 pooling matrices, shipped in both orientations (tiny).
    s_idx = jnp.arange(s, dtype=jnp.int32)
    pht = (s_idx[None, :] // w == jnp.arange(h, dtype=jnp.int32)[:, None]).astype(dtype)  # (h, s)
    pwt = (s_idx[None, :] % w == jnp.arange(w, dtype=jnp.int32)[:, None]).astype(dtype)   # (w, s)
    p = jnp.concatenate([pht, pwt], axis=0).T                                             # (s, h+w)
    inv = jnp.concatenate([jnp.full((h,), 1.0 / w, jnp.float32),
                           jnp.full((w,), 1.0 / h, jnp.float32)]).reshape(1, h + w)

    whT = jnp.asarray(wh).T                # (C_in, C_out)
    wwT = jnp.asarray(ww).T
    bh2 = jnp.asarray(bh).reshape(1, c)
    bw2 = jnp.asarray(bw).reshape(1, c)

    cost = pl.CostEstimate(
        flops=int(n_pad * (4 * c * s * (h + w)       # segment sums (x, x^2)
                           + 2 * c * c * (h + w)     # 1x1 convs
                           + 2 * c * s * (h + w)     # broadcast-back matmuls
                           + 6 * c * s)),            # elementwise
        transcendentals=int(n_pad * c * (h + w)),
        bytes_accessed=int(4 * (2 * n_pad * c * s + 3 * (h + w) * s
                                + 2 * c * c + 2 * c)),
    )

    out_flat = pl.pallas_call(
        diva_kernel,
        out_shape=jax.ShapeDtypeStruct((n_pad, c, s), dtype),
        grid=grid,
        in_specs=[
            pl.BlockSpec((b_blk, c, s), lambda i: (i, 0, 0)),
            pl.BlockSpec((s, h + w), lambda i: (0, 0)),
            pl.BlockSpec((1, h + w), lambda i: (0, 0)),
            pl.BlockSpec((h, s), lambda i: (0, 0)),
            pl.BlockSpec((w, s), lambda i: (0, 0)),
            pl.BlockSpec((c, c), lambda i: (0, 0)),
            pl.BlockSpec((1, c), lambda i: (0, 0)),
            pl.BlockSpec((c, c), lambda i: (0, 0)),
            pl.BlockSpec((1, c), lambda i: (0, 0)),
        ],
        out_specs=pl.BlockSpec((b_blk, c, s), lambda i: (i, 0, 0)),
        compiler_params=pltpu.CompilerParams(
            dimension_semantics=("parallel",),
            vmem_limit_bytes=vmem_limit,
        ),
        cost_estimate=cost,
    )(x_flat, p, inv, pht, pwt, whT, bh2, wwT, bw2)

    return out_flat[:n].reshape(n, c, h, w)


def reference(x, wh, bh, ww, bw):
    # Mirrors the PyTorch module (two-pass biased variance), full f32.
    n, c, h, w = x.shape
    hi = jax.lax.Precision.HIGHEST
    mh = jnp.mean(x, axis=3, keepdims=True)
    vh = jnp.mean((x - mh) ** 2, axis=3, keepdims=True)            # (n,c,h,1)
    mw = jnp.mean(x, axis=2, keepdims=True)
    vw = jnp.mean((x - mw) ** 2, axis=2, keepdims=True)            # (n,c,1,w)
    a_h = jax.nn.sigmoid(
        jnp.einsum('oc,nchw->nohw', wh, vh, precision=hi) + bh.reshape(1, c, 1, 1))
    a_w = jax.nn.sigmoid(
        jnp.einsum('oc,nchw->nohw', ww, vw, precision=hi) + bw.reshape(1, c, 1, 1))
    return x * a_w * a_h


def init_conv_params(key, c_out, c_in):
    # Mimics PyTorch Conv2d default init (kaiming_uniform a=sqrt(5)).
    kw, kb = jax.random.split(key)
    fan_in = c_in  # 1x1 kernel
    bound_w = (6.0 / ((1.0 + 5.0) * fan_in)) ** 0.5
    bound_b = 1.0 / (fan_in ** 0.5)
    w = jax.random.uniform(kw, (c_out, c_in), jnp.float32, -bound_w, bound_w)
    b = jax.random.uniform(kb, (c_out,), jnp.float32, -bound_b, bound_b)
    return w, b


if __name__ == "__main__":
    key = jax.random.PRNGKey(0)
    kx, kh, kw_ = jax.random.split(key, 3)

    N, H, W = 2, 16, 16
    x = jax.random.normal(kx, (N, C, H, W), jnp.float32)

    wh, bh = init_conv_params(kh, C, C)   # conv_h: weight (64,64), bias (64,)
    ww, bw = init_conv_params(kw_, C, C)  # conv_w: weight (64,64), bias (64,)

    out = jax.block_until_ready(diva_attention(x, wh, bh, ww, bw))

    ref = reference(x, wh, bh, ww, bw)
    assert out.shape == (N, C, H, W)
    max_err = float(jnp.max(jnp.abs(out - ref)))
    assert jnp.allclose(out, ref, atol=1e-4, rtol=1e-4), \
        f"mismatch vs reference (max err {max_err})"

    print("KERNEL_OK")
</pallas_src>

<mosaic_0001>
module attributes {stable_mosaic.version = 11 : i64} {
  func.func @diva_kernel(%arg0: i32, %arg1: memref<1x64x256xf32, #tpu.memory_space<vmem>>, %arg2: memref<256x32xf32, #tpu.memory_space<vmem>>, %arg3: memref<1x32xf32, #tpu.memory_space<vmem>>, %arg4: memref<16x256xf32, #tpu.memory_space<vmem>>, %arg5: memref<16x256xf32, #tpu.memory_space<vmem>>, %arg6: memref<64x64xf32, #tpu.memory_space<vmem>>, %arg7: memref<1x64xf32, #tpu.memory_space<vmem>>, %arg8: memref<64x64xf32, #tpu.memory_space<vmem>>, %arg9: memref<1x64xf32, #tpu.memory_space<vmem>>, %arg10: memref<1x64x256xf32, #tpu.memory_space<vmem>>) attributes {dimension_semantics = [#tpu.dimension_semantics<parallel>], iteration_bounds = array<i64: 2>, scalar_prefetch = 0 : i64, scratch_operands = 0 : i64, tpu.core_type = #tpu.core_type<tc>, window_params = [{transform_indices = @transform_0, window_bounds = array<i64: 1, 64, 256>}, {pipeline_mode = #tpu.pipeline_mode<synchronous>, transform_indices = @transform_1, window_bounds = array<i64: 256, 32>}, {pipeline_mode = #tpu.pipeline_mode<synchronous>, transform_indices = @transform_2, window_bounds = array<i64: 1, 32>}, {pipeline_mode = #tpu.pipeline_mode<synchronous>, transform_indices = @transform_3, window_bounds = array<i64: 16, 256>}, {pipeline_mode = #tpu.pipeline_mode<synchronous>, transform_indices = @transform_4, window_bounds = array<i64: 16, 256>}, {pipeline_mode = #tpu.pipeline_mode<synchronous>, transform_indices = @transform_5, window_bounds = array<i64: 64, 64>}, {pipeline_mode = #tpu.pipeline_mode<synchronous>, transform_indices = @transform_6, window_bounds = array<i64: 1, 64>}, {pipeline_mode = #tpu.pipeline_mode<synchronous>, transform_indices = @transform_7, window_bounds = array<i64: 64, 64>}, {pipeline_mode = #tpu.pipeline_mode<synchronous>, transform_indices = @transform_8, window_bounds = array<i64: 1, 64>}, {transform_indices = @transform_9, window_bounds = array<i64: 1, 64, 256>}]} {
    %c0 = arith.constant 0 : index
    %c0_0 = arith.constant 0 : index
    %c0_1 = arith.constant 0 : index
    %0 = vector.load %arg1[%c0, %c0_0, %c0_1] : memref<1x64x256xf32, #tpu.memory_space<vmem>>, vector<1x64x256xf32>
    %1 = vector.shape_cast %0 : vector<1x64x256xf32> to vector<64x256xf32>
    %2 = arith.mulf %1, %1 : vector<64x256xf32>
    %c0_2 = arith.constant 0 : index
    %c0_3 = arith.constant 0 : index
    %3 = vector.load %arg2[%c0_2, %c0_3] : memref<256x32xf32, #tpu.memory_space<vmem>>, vector<256x32xf32>
    %cst = arith.constant dense<0.000000e+00> : vector<64x32xf32>
    %4 = tpu.matmul %1, %3, %cst {dimension_numbers = #tpu.dot_dimension_numbers<[1], [0], [0], [1], [0, 0, 1, 1], [], []>} : vector<64x256xf32>, vector<256x32xf32>, vector<64x32xf32> -> vector<64x32xf32>
    %cst_4 = arith.constant dense<0.000000e+00> : vector<64x32xf32>
    %5 = tpu.matmul %2, %3, %cst_4 {dimension_numbers = #tpu.dot_dimension_numbers<[1], [0], [0], [1], [0, 0, 1, 1], [], []>} : vector<64x256xf32>, vector<256x32xf32>, vector<64x32xf32> -> vector<64x32xf32>
    %c0_5 = arith.constant 0 : index
    %c0_6 = arith.constant 0 : index
    %6 = vector.load %arg3[%c0_5, %c0_6] : memref<1x32xf32, #tpu.memory_space<vmem>>, vector<1x32xf32>
    %7 = vector.broadcast %6 : vector<1x32xf32> to vector<64x32xf32>
    %8 = arith.mulf %4, %7 : vector<64x32xf32>
    %9 = vector.broadcast %6 : vector<1x32xf32> to vector<64x32xf32>
    %10 = arith.mulf %5, %9 : vector<64x32xf32>
    %11 = arith.mulf %8, %8 : vector<64x32xf32>
    %12 = arith.subf %10, %11 : vector<64x32xf32>
    %cst_7 = arith.constant 0.000000e+00 : f32
    %13 = vector.broadcast %cst_7 : f32 to vector<64x32xf32>
    %14 = arith.maximumf %12, %13 : vector<64x32xf32>
    %15 = vector.shape_cast %14 : vector<64x32xf32> to vector<1x64x32xf32>
    %16 = vector.extract_strided_slice %15 {offsets = [0, 0, 0], sizes = [1, 64, 16], strides = [1, 1, 1]} : vector<1x64x32xf32> to vector<1x64x16xf32>
    %17 = tpu.transpose %16, [0, 2, 1] : vector<1x64x16xf32> -> vector<1x16x64xf32>
    %18 = vector.shape_cast %17 : vector<1x16x64xf32> to vector<16x64xf32>
    %19 = vector.extract_strided_slice %15 {offsets = [0, 0, 16], sizes = [1, 64, 16], strides = [1, 1, 1]} : vector<1x64x32xf32> to vector<1x64x16xf32>
    %20 = tpu.transpose %19, [0, 2, 1] : vector<1x64x16xf32> -> vector<1x16x64xf32>
    %21 = vector.shape_cast %20 : vector<1x16x64xf32> to vector<16x64xf32>
    %c0_8 = arith.constant 0 : index
    %c0_9 = arith.constant 0 : index
    %22 = vector.load %arg6[%c0_8, %c0_9] : memref<64x64xf32, #tpu.memory_space<vmem>>, vector<64x64xf32>
    %cst_10 = arith.constant dense<0.000000e+00> : vector<16x64xf32>
    %23 = tpu.matmul %18, %22, %cst_10 {dimension_numbers = #tpu.dot_dimension_numbers<[1], [0], [0], [1], [0, 0, 1, 1], [], []>} : vector<16x64xf32>, vector<64x64xf32>, vector<16x64xf32> -> vector<16x64xf32>
    %c0_11 = arith.constant 0 : index
    %c0_12 = arith.constant 0 : index
    %24 = vector.load %arg7[%c0_11, %c0_12] : memref<1x64xf32, #tpu.memory_space<vmem>>, vector<1x64xf32>
    %25 = vector.broadcast %24 : vector<1x64xf32> to vector<16x64xf32>
    %26 = arith.addf %23, %25 : vector<16x64xf32>
    %27 = arith.negf %26 : vector<16x64xf32>
    %28 = math.exp %27 : vector<16x64xf32>
    %cst_13 = arith.constant 1.000000e+00 : f32
    %29 = vector.broadcast %cst_13 : f32 to vector<16x64xf32>
    %30 = arith.addf %29, %28 : vector<16x64xf32>
    %31 = arith.divf %29, %30 : vector<16x64xf32>
    %c0_14 = arith.constant 0 : index
    %c0_15 = arith.constant 0 : index
    %32 = vector.load %arg8[%c0_14, %c0_15] : memref<64x64xf32, #tpu.memory_space<vmem>>, vector<64x64xf32>
    %cst_16 = arith.constant dense<0.000000e+00> : vector<16x64xf32>
    %33 = tpu.matmul %21, %32, %cst_16 {dimension_numbers = #tpu.dot_dimension_numbers<[1], [0], [0], [1], [0, 0, 1, 1], [], []>} : vector<16x64xf32>, vector<64x64xf32>, vector<16x64xf32> -> vector<16x64xf32>
    %c0_17 = arith.constant 0 : index
    %c0_18 = arith.constant 0 : index
    %34 = vector.load %arg9[%c0_17, %c0_18] : memref<1x64xf32, #tpu.memory_space<vmem>>, vector<1x64xf32>
    %35 = vector.broadcast %34 : vector<1x64xf32> to vector<16x64xf32>
    %36 = arith.addf %33, %35 : vector<16x64xf32>
    %37 = arith.negf %36 : vector<16x64xf32>
    %38 = math.exp %37 : vector<16x64xf32>
    %cst_19 = arith.constant 1.000000e+00 : f32
    %39 = vector.broadcast %cst_19 : f32 to vector<16x64xf32>
    %40 = arith.addf %39, %38 : vector<16x64xf32>
    %41 = arith.divf %39, %40 : vector<16x64xf32>
    %42 = vector.shape_cast %31 : vector<16x64xf32> to vector<1x16x64xf32>
    %43 = tpu.transpose %42, [0, 2, 1] : vector<1x16x64xf32> -> vector<1x64x16xf32>
    %44 = vector.shape_cast %43 : vector<1x64x16xf32> to vector<64x16xf32>
    %45 = vector.shape_cast %41 : vector<16x64xf32> to vector<1x16x64xf32>
    %46 = tpu.transpose %45, [0, 2, 1] : vector<1x16x64xf32> -> vector<1x64x16xf32>
    %47 = vector.shape_cast %46 : vector<1x64x16xf32> to vector<64x16xf32>
    %c0_20 = arith.constant 0 : index
    %c0_21 = arith.constant 0 : index
    %48 = vector.load %arg4[%c0_20, %c0_21] : memref<16x256xf32, #tpu.memory_space<vmem>>, vector<16x256xf32>
    %cst_22 = arith.constant dense<0.000000e+00> : vector<64x256xf32>
    %49 = tpu.matmul %44, %48, %cst_22 {dimension_numbers = #tpu.dot_dimension_numbers<[1], [0], [0], [1], [0, 0, 1, 1], [], []>} : vector<64x16xf32>, vector<16x256xf32>, vector<64x256xf32> -> vector<64x256xf32>
    %c0_23 = arith.constant 0 : index
    %c0_24 = arith.constant 0 : index
    %50 = vector.load %arg5[%c0_23, %c0_24] : memref<16x256xf32, #tpu.memory_space<vmem>>, vector<16x256xf32>
    %cst_25 = arith.constant dense<0.000000e+00> : vector<64x256xf32>
    %51 = tpu.matmul %47, %50, %cst_25 {dimension_numbers = #tpu.dot_dimension_numbers<[1], [0], [0], [1], [0, 0, 1, 1], [], []>} : vector<64x16xf32>, vector<16x256xf32>, vector<64x256xf32> -> vector<64x256xf32>
    %52 = arith.mulf %1, %49 : vector<64x256xf32>
    %53 = arith.mulf %52, %51 : vector<64x256xf32>
    %54 = vector.shape_cast %53 : vector<64x256xf32> to vector<1x64x256xf32>
    %c0_26 = arith.constant 0 : index
    %c0_27 = arith.constant 0 : index
    %c0_28 = arith.constant 0 : index
    %55 = vector.load %arg10[%c0_26, %c0_27, %c0_28] : memref<1x64x256xf32, #tpu.memory_space<vmem>>, vector<1x64x256xf32>
    tpu.vector_store %arg10[%c0_26, %c0_27, %c0_28], %54 {strides = array<i32>} : memref<1x64x256xf32, #tpu.memory_space<vmem>>, vector<1x64x256xf32>,
    return
  }
  func.func @transform_0(%arg0: i32) -> (i32, i32, i32) {
    %c0_i32 = arith.constant 0 : i32
    %c0_i32_0 = arith.constant 0 : i32
    %c0_i32_1 = arith.constant 0 : i32
    return %arg0, %c0_i32, %c0_i32_0 : i32, i32, i32
  }
  func.func @transform_1(%arg0: i32) -> (i32, i32) {
    %c0_i32 = arith.constant 0 : i32
    %c0_i32_0 = arith.constant 0 : i32
    %c0_i32_1 = arith.constant 0 : i32
    return %c0_i32, %c0_i32_0 : i32, i32
  }
  func.func @transform_2(%arg0: i32) -> (i32, i32) {
    %c0_i32 = arith.constant 0 : i32
    %c0_i32_0 = arith.constant 0 : i32
    %c0_i32_1 = arith.constant 0 : i32
    return %c0_i32, %c0_i32_0 : i32, i32
  }
  func.func @transform_3(%arg0: i32) -> (i32, i32) {
    %c0_i32 = arith.constant 0 : i32
    %c0_i32_0 = arith.constant 0 : i32
    %c0_i32_1 = arith.constant 0 : i32
    return %c0_i32, %c0_i32_0 : i32, i32
  }
  func.func @transform_4(%arg0: i32) -> (i32, i32) {
    %c0_i32 = arith.constant 0 : i32
    %c0_i32_0 = arith.constant 0 : i32
    %c0_i32_1 = arith.constant 0 : i32
    return %c0_i32, %c0_i32_0 : i32, i32
  }
  func.func @transform_5(%arg0: i32) -> (i32, i32) {
    %c0_i32 = arith.constant 0 : i32
    %c0_i32_0 = arith.constant 0 : i32
    %c0_i32_1 = arith.constant 0 : i32
    return %c0_i32, %c0_i32_0 : i32, i32
  }
  func.func @transform_6(%arg0: i32) -> (i32, i32) {
    %c0_i32 = arith.constant 0 : i32
    %c0_i32_0 = arith.constant 0 : i32
    %c0_i32_1 = arith.constant 0 : i32
    return %c0_i32, %c0_i32_0 : i32, i32
  }
  func.func @transform_7(%arg0: i32) -> (i32, i32) {
    %c0_i32 = arith.constant 0 : i32
    %c0_i32_0 = arith.constant 0 : i32
    %c0_i32_1 = arith.constant 0 : i32
    return %c0_i32, %c0_i32_0 : i32, i32
  }
  func.func @transform_8(%arg0: i32) -> (i32, i32) {
    %c0_i32 = arith.constant 0 : i32
    %c0_i32_0 = arith.constant 0 : i32
    %c0_i32_1 = arith.constant 0 : i32
    return %c0_i32, %c0_i32_0 : i32, i32
  }
  func.func @transform_9(%arg0: i32) -> (i32, i32, i32) {
    %c0_i32 = arith.constant 0 : i32
    %c0_i32_0 = arith.constant 0 : i32
    %c0_i32_1 = arith.constant 0 : i32
    return %arg0, %c0_i32, %c0_i32_0 : i32, i32, i32
  }
}

</mosaic_0001>

<bundles_post_ra>
// kernel: tpu_custom_call.1
= control target key start
LH: loop header
LB: loop body
LE: loop exit
PB: predicated region body
PF: predicated region fallthrough
CT: control target
= control target key end

     0   :  { %s2278_s0 = inlined_call_operand.vmem [shape: f32[2,64,256], index: 0, kind: input, shape index: {}]   ;;  %s2279_s1 = inlined_call_operand.vmem [shape: f32[256,32], index: 1, kind: input, shape index: {}]   ;;  %s2280_s2 = inlined_call_operand.hbm [shape: f32[1,32], index: 2, kind: input, shape index: {}]   ;;  %s2281_s3 = inlined_call_operand.hbm [shape: f32[16,256], index: 3, kind: input, shape index: {}]   ;;  %s2282_s4 = inlined_call_operand.hbm [shape: f32[16,256], index: 4, kind: input, shape index: {}]   ;;  %s2283_s5 = inlined_call_operand.vmem [shape: f32[64,64], index: 5, kind: input, shape index: {}]   ;;  %s2284_s6 = inlined_call_operand.vmem [shape: f32[1,64], index: 6, kind: input, shape index: {}]   ;;  %s2285_s7 = inlined_call_operand.hbm [shape: f32[64,64], index: 7, kind: input, shape index: {}]   ;;  %s2286_s8 = inlined_call_operand.vmem [shape: f32[1,64], index: 8, kind: input, shape index: {}]   ;;  %s2287_s9 = inlined_call_operand.hbm [shape: f32[2,64,256], index: 9, kind: output, shape index: {}]  }
   0x1   :  { %2291 = sst [smem:[#allocation18_spill]] %s2280_s2 }
   0x2   :  { %2292 = sst [smem:[#allocation19_spill]] %s2281_s3 }
   0x3   :  { %14 = vsyncpa [#allocation3], 0 }
   0x4   :  { %15 = vsyncpa [#allocation6], 0 }
   0x5   :  { %16 = vsyncpa [#allocation9], 0 }
   0x6   :  { %17 = vsyncpa [#allocation4], 0 }
   0x7   :  { %19 = vsyncpa [#allocation4 + $0x1], 0  ;;  %s1817_s30 = smov 0   ;;  %s1819_s10 = smov 0  }
   0x8   :  { %s1821_s11 = smov 0   ;;  %s1823_s12 = smov 0  }
   0x9 LB: > { %2293 = sst [smem:[#allocation15_spill]] %s1750_s11  ;;  %s1838_s13 = sadd.s32 4294967295, %s1754_s12   ;;  %s1754_s12 = sphi %s1823_s12, %s2302_s12   ;;  %s1750_s11 = sphi %s1821_s11, %s2304_s11   ;;  %s1746_s10 = sphi %s1819_s10, %s2306_s10   ;;  %s1742_s30 = sphi %s1817_s30, %s2305_s30  }
   0xa   : > { %s1375_s14 = sadd.s32 4294967294, %s1754_s12   ;;  %s1842_s15 = sadd.s32 1, %s1754_s12  }
   0xb   : > { %2294 = sst [smem:[#allocation16_spill]] %s1842_s15  ;;  %s226_s16 = sadd.s32 1, %s1750_s11 }
   0xc   : > { %s223_s17 = ssub.s32 %s1754_s12, %s1842_s15  ;;  %p236_p0 = scmp.ne.s32.totalorder %s1750_s11, %s1746_s10 }
   0xd   : > { %p224_p1 = scmp.eq.s32.totalorder %s223_s17, 0  ;;  %p237_p2 = scmp.eq.s32.totalorder %s1838_s13, 1 }
   0xe   : > { %p242_p3 = scmp.ne.s32.totalorder %s1746_s10, %s1742_s30  ;;  %p243_p4 = scmp.eq.s32.totalorder %s1375_s14, 1 }
   0xf   : > { %s1853_s18 = scalar_select %p224_p1, %s1750_s11, %s226_s16  }
  0x10   : > { %p1855_p5 = por %p237_p2, %p236_p0  ;;  %p1859_p6 = por %p243_p4, %p242_p3 }
  0x11   : > { %2295 = sst [smem:[#allocation17_spill]] %s1853_s18  ;;  %p1376_p7 = scmp.ge.s32.totalorder %s1754_s12, 1 }
  0x12   : > { %p250_p8 = scmp.lt.s32.totalorder %s1754_s12, 3  ;;  %p1488_p9 = scmp.eq.s32.totalorder %s1838_s13, 0 }
  0x13   : > { %s2299_s3 = sld [smem:[#allocation19_spill]]  ;;  %s1756_s25 = smov [#allocation5]  }
  0x14   : > { %p1866_p10 = pnand %p1376_p7, %p250_p8  ;;  %s278_s26 = sshll.u32 %s1756_s25, 4  ;;  %s279_s26 = int_to_ptr.vmem [resolvable:$true] %s278_s26 }
  0x15   : > { %s2301_s2 = sld [smem:[#allocation18_spill]]  ;;  %s1757_s16 = smov 256  }
  0x16   : > { %p1471_p11 = pneg %p1866_p10  ;;  %s1758_s17 = smov 16  }
  0x17   : > { %s1759_s22 = smov [#allocation2]   ;;  %s290_s18 = sshll.u32 %s2282_s4, 4  ;;  %s291_s18 = int_to_ptr.hbm [resolvable:$true] %s290_s18 }
  0x18   : > { %p1877_p12 = pnand %p1488_p9, %p1471_p11  ;;  %s267_s23 = sshll.u32 %s1759_s22, 4  ;;  %s268_s23 = int_to_ptr.vmem [resolvable:$true] %s267_s23 }
  0x19   : > { %s276_s24 = sshll.u32 %s2299_s3, 4  ;;  %s1760_s11 = smov [#allocation7]   ;;  %s277_s24 = int_to_ptr.hbm [resolvable:$true] %s276_s24 }
  0x1a   : > { %1477 = dma.hbm_to_vmem [thread:$0]  (!%p1877_p12), %s277_s24, 512, %s279_s26, [#allocation6], %s1757_s16, %s1757_s16, %s1758_s17  }
  0x1b   : > { %s265_s14 = sshll.u32 %s2301_s2, 4  ;;  %s310_s2 = sshll.u32 %s2285_s7, 4  ;;  %s266_s14 = int_to_ptr.hbm [resolvable:$true] %s265_s14  ;;  %s311_s2 = int_to_ptr.hbm [resolvable:$true] %s310_s2 }
  0x1c   : > { %1474 = dma.hbm_to_vmem [thread:$0]  (!%p1877_p12), %s266_s14, 16, %s268_s23, [#allocation3]  }
  0x1d   : > { %s292_s15 = sshll.u32 %s1760_s11, 4  ;;  %s1761_s24 = smov [#allocation8]   ;;  %s293_s15 = int_to_ptr.vmem [resolvable:$true] %s292_s15 }
  0x1e   : > { %1480 = dma.hbm_to_vmem [thread:$0]  (!%p1877_p12), %s291_s18, 512, %s293_s15, [#allocation6], %s1757_s16, %s1757_s16, %s1758_s17  }
  0x1f   : > { %s312_s26 = sshll.u32 %s1761_s24, 4  ;;  %s1762_s3 = smov 128   ;;  %s313_s26 = int_to_ptr.vmem [resolvable:$true] %s312_s26 }
  0x20   : > { %s1763_s22 = smov 8   ;;  %339 = sbr.rel (%p1866_p10) target bundleno = 1027 (0x403), region = 56 }
  0x21   : > { %1483 = dma.hbm_to_vmem [thread:$0]  (!%p1877_p12), %s311_s2, 1024, %s313_s26, [#allocation9], %s1762_s3, %s1762_s3, %s1763_s22  }
  0x25   : > { %1725 = dma.done.wait (%p1488_p9), [#allocation3], 16  }
  0x26   : > { %1727 = vsyncadd (%p1488_p9), [#allocation3], 4294967280 }
  0x27   : > { %1729 = dma.done.wait (%p1488_p9), [#allocation6], 1024  }
  0x28   : > { %1731 = vsyncadd (%p1488_p9), [#allocation6], 4294966272 }
  0x29   : > { %1733 = dma.done.wait (%p1488_p9), [#allocation9], 1024  }
  0x2a   : > { %1735 = vsyncadd (%p1488_p9), [#allocation9], 4294966272  ;;  %v443_v0 = vld [vmem:[%s2279_s1 + $0x78] sm:$0xff]  ;;  %v442_v2 = vld [vmem:[%s2279_s1 + $0x70] sm:$0xff]  ;;  %p391_p13 = scmp.lt.s32.totalorder %s1838_s13, 1  ;;  %s1764_s11 = smov 112  }
  0x2b   : > { %v459_v1 = vld [vmem:[%s2279_s1 + $0xf8] sm:$0xff]  ;;  %542 = vmatpush.msra.mxu2 %v443_v0  ;;  %v458_v3 = vld [vmem:[%s2279_s1 + $0xf0] sm:$0xff]  ;;  %460 = vmatpush.msra.mxu0 %v443_v0  ;;  %v441_v4 = vld [vmem:[%s2279_s1 + $0x68] sm:$0xff]  ;;  %vm776_vm0 = vcmask 523264   ;;  %s1436_s17 = sshll.u32 %s1838_s13, 7 }
  0x2c   : > { %583 = vmatpush.msra.mxu3 %v459_v1  ;;  %501 = vmatpush.msra.mxu1 %v459_v1  ;;  %v457_v5 = vld [vmem:[%s2279_s1 + $0xe8] sm:$0xff]  ;;  %v440_v6 = vld [vmem:[%s2279_s1 + $0x60] sm:$0xff]  ;;  %v439_v8 = vld [vmem:[%s2279_s1 + $0x58] sm:$0xff]  ;;  %s392_s15 = scalar_select %p391_p13, %s1838_s13, 1 }
  0x2d   : > { %543 = vmatpush.msra.mxu2 %v442_v2  ;;  %461 = vmatpush.msra.mxu0 %v442_v2  ;;  %v456_v7 = vld [vmem:[%s2279_s1 + $0xe0] sm:$0xff]  ;;  %v455_v9 = vld [vmem:[%s2279_s1 + $0xd8] sm:$0xff]  ;;  %v438_v10 = vld [vmem:[%s2279_s1 + $0x50] sm:$0xff] }
  0x2e   : > { %584 = vmatpush.msra.mxu3 %v458_v3  ;;  %502 = vmatpush.msra.mxu1 %v458_v3  ;;  %v454_v11 = vld [vmem:[%s2279_s1 + $0xd0] sm:$0xff]  ;;  %v437_v12 = vld [vmem:[%s2279_s1 + $0x48] sm:$0xff]  ;;  %v436_v14 = vld [vmem:[%s2279_s1 + $0x40] sm:$0xff]  ;;  %s1435_s28 = sshll.u32 %s392_s15, 7 }
  0x2f   : > { %544 = vmatpush.msra.mxu2 %v441_v4  ;;  %462 = vmatpush.msra.mxu0 %v441_v4  ;;  %v453_v13 = vld [vmem:[%s2279_s1 + $0xc8] sm:$0xff]  ;;  %v452_v15 = vld [vmem:[%s2279_s1 + $0xc0] sm:$0xff]  ;;  %v435_v16 = vld [vmem:[%s2279_s1 + $0x38] sm:$0xff]  ;;  %s1995_s27 = scalar_lea.vmem %s2278_s0, %s1435_s28  ;;  %s1268_s28 = scalar_lea.hbm %s2287_s9, %s1436_s17 }
  0x30   : > { %585 = vmatpush.msra.mxu3 %v457_v5  ;;  %503 = vmatpush.msra.mxu1 %v457_v5  ;;  %v451_v17 = vld [vmem:[%s2279_s1 + $0xb8] sm:$0xff]  ;;  %v434_v18 = vld [vmem:[%s2279_s1 + $0x30] sm:$0xff]  ;;  %v433_v20 = vld [vmem:[%s2279_s1 + $0x28] sm:$0xff]  ;;  %s1271_s24 = sshll.u32 %s1268_s28, 4  ;;  %s1272_s24 = int_to_ptr.hbm [resolvable:$true] %s1271_s24 }
  0x31   : > { %545 = vmatpush.msra.mxu2 %v440_v6  ;;  %463 = vmatpush.msra.mxu0 %v440_v6  ;;  %v450_v19 = vld [vmem:[%s2279_s1 + $0xb0] sm:$0xff]  ;;  %v449_v21 = vld [vmem:[%s2279_s1 + $0xa8] sm:$0xff]  ;;  %v432_v22 = vld [vmem:[%s2279_s1 + $0x20] sm:$0xff]  ;;  %s1694_s26 = sshra.s32 %s1272_s24, 4  ;;  %s1695_s26 = int_to_ptr.hbm [resolvable:$true] %s1694_s26 }
  0x32   : > { %586 = vmatpush.msra.mxu3 %v456_v7  ;;  %504 = vmatpush.msra.mxu1 %v456_v7  ;;  %v448_v23 = vld [vmem:[%s2279_s1 + $0xa0] sm:$0xff]  ;;  %v431_v24 = vld [vmem:[%s2279_s1 + $0x18] sm:$0xff]  ;;  %v430_v26 = vld [vmem:[%s2279_s1 + $0x10] sm:$0xff]  ;;  %s1696_s3 = scalar_lea.hbm %s1695_s26, 128  ;;  %p1701_p3 = scmp.lt.s32.totalorder %s1695_s26, %s2287_s9 }
  0x33   : > { %546 = vmatpush.msra.mxu2 %v439_v8  ;;  %464 = vmatpush.msra.mxu0 %v439_v8  ;;  %v447_v25 = vld [vmem:[%s2279_s1 + $0x98] sm:$0xff]  ;;  %v446_v27 = vld [vmem:[%s2279_s1 + $0x90] sm:$0xff]  ;;  %v2004_v28 = vld [vmem:[%s1995_s27] sm:$0xff]  ;;  %p1697_p0 = scmp.ne.s32.totalorder %s1695_s26, %s1696_s3 }
  0x34   : > { %587 = vmatpush.msra.mxu3 %v455_v9  ;;  %505 = vmatpush.msra.mxu1 %v455_v9  ;;  %v2007_v29 = vld [vmem:[%s1995_s27 + $0x8] sm:$0xff]  ;;  %v428_v32 = vld [vmem:[%s2279_s1] sm:$0xff]  ;;  %v412_v34 = vmul.f32 %v2004_v28, %v2004_v28  ;;  %v2026_v36 = vld [vmem:[%s1995_s27 + $0x10] sm:$0xff] }
  0x35   : > { %547 = vmatpush.msra.mxu2 %v438_v10  ;;  %465 = vmatpush.msra.mxu0 %v438_v10  ;;  %v429_v30 = vld [vmem:[%s2279_s1 + $0x8] sm:$0xff]  ;;  %v444_v33 = vld [vmem:[%s2279_s1 + $0x80] sm:$0xff]  ;;  %v413_v35 = vmul.f32 %v2007_v29, %v2007_v29  ;;  %v2029_v37 = vld [vmem:[%s1995_s27 + $0x18] sm:$0xff]  ;;  %v414_v38 = vmul.f32 %v2026_v36, %v2026_v36  ;;  %p1698_p1 = pnand %p1697_p0, %p1855_p5 }
  0x36   : > { %588 = vmatpush.msra.mxu3 %v454_v11  ;;  %506 = vmatpush.msra.mxu1 %v454_v11  ;;  %v445_v31 = vld [vmem:[%s2279_s1 + $0x88] sm:$0xff]  ;;  %v415_v39 = vmul.f32 %v2029_v37, %v2029_v37  ;;  %v2038_v40 = vld [vmem:[%s1995_s27 + $0x20] sm:$0xff]  ;;  %v2050_v44 = vld [vmem:[%s1995_s27 + $0x30] sm:$0xff] }
  0x37   : > { %548 = vmatpush.msra.mxu2 %v437_v12  ;;  %466 = vmatpush.msra.mxu0 %v437_v12  ;;  %v2041_v41 = vld [vmem:[%s1995_s27 + $0x28] sm:$0xff]  ;;  %v416_v42 = vmul.f32 %v2038_v40, %v2038_v40  ;;  %v2053_v45 = vld [vmem:[%s1995_s27 + $0x38] sm:$0xff]  ;;  %v418_v46 = vmul.f32 %v2050_v44, %v2050_v44  ;;  %v2062_v48 = vld [vmem:[%s1995_s27 + $0x40] sm:$0xff]  ;;  %p1699_p2 = pneg %p1698_p1 }
  0x38   : > { %589 = vmatpush.msra.mxu3 %v453_v13  ;;  %507 = vmatpush.msra.mxu1 %v453_v13  ;;  %v417_v43 = vmul.f32 %v2041_v41, %v2041_v41  ;;  %v419_v47 = vmul.f32 %v2053_v45, %v2053_v45  ;;  %v2065_v49 = vld [vmem:[%s1995_s27 + $0x48] sm:$0xff]  ;;  %v420_v50 = vmul.f32 %v2062_v48, %v2062_v48  ;;  %v2074_v52 = vld [vmem:[%s1995_s27 + $0x50] sm:$0xff]  ;;  %v2077_v53 = vld [vmem:[%s1995_s27 + $0x58] sm:$0xff] }
  0x39   : > { %549 = vmatpush.msra.mxu2 %v436_v14  ;;  %467 = vmatpush.msra.mxu0 %v436_v14  ;;  %v421_v51 = vmul.f32 %v2065_v49, %v2065_v49  ;;  %v422_v54 = vmul.f32 %v2074_v52, %v2074_v52  ;;  %v423_v55 = vmul.f32 %v2077_v53, %v2077_v53  ;;  %v2086_v56 = vld [vmem:[%s1995_s27 + $0x60] sm:$0xff]  ;;  %v2089_v57 = vld [vmem:[%s1995_s27 + $0x68] sm:$0xff]  ;;  %v2098_v60 = vld [vmem:[%s1995_s27 + $0x70] sm:$0xff] }
  0x3a   : > { %590 = vmatpush.msra.mxu3 %v452_v15  ;;  %508 = vmatpush.msra.mxu1 %v452_v15  ;;  %v424_v58 = vmul.f32 %v2086_v56, %v2086_v56  ;;  %v425_v59 = vmul.f32 %v2089_v57, %v2089_v57  ;;  %v2101_v61 = vld [vmem:[%s1995_s27 + $0x78] sm:$0xff]  ;;  %v426_v62 = vmul.f32 %v2098_v60, %v2098_v60  ;;  %v2111_v0 = vld [vmem:[#allocation2] ss:$0 sm:$0xff]  ;;  %s388_s27 = sand.u32 1, %s1746_s10  }
  0x3b   : > { %550 = vmatpush.msra.mxu2 %v435_v16  ;;  %468 = vmatpush.msra.mxu0 %v435_v16  ;;  %v427_v63 = vmul.f32 %v2101_v61, %v2101_v61  ;;  %s1387_s14 = sshll.u32 %s388_s27, 7  ;;  %s1257_s13 = scalar_lea.sflag [#allocation4], %s388_s27 }
  0x3c   : > { %591 = vmatpush.msra.mxu3 %v451_v17  ;;  %509 = vmatpush.msra.mxu1 %v451_v17  ;;  %s2212_s16 = scalar_lea.vmem [#allocation10], %s1387_s14 }
  0x3d   : > { %551 = vmatpush.msra.mxu2 %v434_v18  ;;  %469 = vmatpush.msra.mxu0 %v434_v18  ;;  %s1269_s29 = sshll.u32 %s2212_s16, 4  ;;  %s1270_s29 = int_to_ptr.vmem [resolvable:$true] %s1269_s29 }
  0x3e   : > { %592 = vmatpush.msra.mxu3 %v450_v19  ;;  %510 = vmatpush.msra.mxu1 %v450_v19 }
  0x3f   : > { %552 = vmatpush.msra.mxu2 %v433_v20  ;;  %470 = vmatpush.msra.mxu0 %v433_v20 }
  0x40   : > { %593 = vmatpush.msra.mxu3 %v449_v21  ;;  %511 = vmatpush.msra.mxu1 %v449_v21 }
  0x41   : > { %553 = vmatpush.msra.mxu2 %v432_v22  ;;  %471 = vmatpush.msra.mxu0 %v432_v22 }
  0x42   : > { %594 = vmatpush.msra.mxu3 %v448_v23  ;;  %512 = vmatpush.msra.mxu1 %v448_v23 }
  0x43   : > { %554 = vmatpush.msra.mxu2 %v431_v24  ;;  %472 = vmatpush.msra.mxu0 %v431_v24 }
  0x44   : > { %595 = vmatpush.msra.mxu3 %v447_v25  ;;  %513 = vmatpush.msra.mxu1 %v447_v25 }
  0x45   : > { %555 = vmatpush.msra.mxu2 %v430_v26  ;;  %473 = vmatpush.msra.mxu0 %v430_v26 }
  0x46   : > { %596 = vmatpush.msra.mxu3 %v446_v27  ;;  %514 = vmatpush.msra.mxu1 %v446_v27 }
  0x47   : > { %556 = vmatpush.msra.mxu2 %v429_v30  ;;  %474 = vmatpush.msra.mxu0 %v429_v30 }
  0x48   : > { %597 = vmatpush.msra.mxu3 %v445_v31  ;;  %515 = vmatpush.msra.mxu1 %v445_v31 }
  0x49   : > { %557 = vmatpush.msra.mxu2 %v428_v32  ;;  %475 = vmatpush.msra.mxu0 %v428_v32 }
  0x4a   : > { %598 = vmatpush.msra.mxu3 %v444_v33  ;;  %558 = vmatmul.f32.vlgmr.msra.gmra.mxu2 %v412_v34 }
  0x4b   : > { %599 = vmatmul.f32.vlgmr.msra.gmra.mxu3 %v413_v35  ;;  %516 = vmatpush.msra.mxu1 %v444_v33 }
  0x4c   : > { %476 = vmatmul.f32.vlgmr.msra.gmra.mxu0 %v2004_v28  ;;  %517 = vmatmul.f32.vlgmr.msra.gmra.mxu1 %v2007_v29 }
  0x52   : > { %561 = vmatmul.f32.gmra.mxu2 %v414_v38 }
  0x53   : > { %602 = vmatmul.f32.gmra.mxu3 %v415_v39 }
  0x54   : > { %479 = vmatmul.f32.gmra.mxu0 %v2026_v36  ;;  %520 = vmatmul.f32.gmra.mxu1 %v2029_v37 }
  0x5a   : > { %564 = vmatmul.f32.gmra.mxu2 %v416_v42 }
  0x5b   : > { %605 = vmatmul.f32.gmra.mxu3 %v417_v43 }
  0x5c   : > { %482 = vmatmul.f32.gmra.mxu0 %v2038_v40  ;;  %523 = vmatmul.f32.gmra.mxu1 %v2041_v41 }
  0x62   : > { %567 = vmatmul.f32.gmra.mxu2 %v418_v46 }
  0x63   : > { %608 = vmatmul.f32.gmra.mxu3 %v419_v47 }
  0x64   : > { %485 = vmatmul.f32.gmra.mxu0 %v2050_v44  ;;  %526 = vmatmul.f32.gmra.mxu1 %v2053_v45 }
  0x6a   : > { %570 = vmatmul.f32.gmra.mxu2 %v420_v50 }
  0x6b   : > { %611 = vmatmul.f32.gmra.mxu3 %v421_v51 }
  0x6c   : > { %488 = vmatmul.f32.gmra.mxu0 %v2062_v48  ;;  %529 = vmatmul.f32.gmra.mxu1 %v2065_v49 }
  0x72   : > { %573 = vmatmul.f32.gmra.mxu2 %v422_v54 }
  0x73   : > { %614 = vmatmul.f32.gmra.mxu3 %v423_v55 }
  0x74   : > { %491 = vmatmul.f32.gmra.mxu0 %v2074_v52  ;;  %532 = vmatmul.f32.gmra.mxu1 %v2077_v53 }
  0x7a   : > { %576 = vmatmul.f32.gmra.mxu2 %v424_v58 }
  0x7b   : > { %617 = vmatmul.f32.gmra.mxu3 %v425_v59 }
  0x7c   : > { %494 = vmatmul.f32.gmra.mxu0 %v2086_v56  ;;  %535 = vmatmul.f32.gmra.mxu1 %v2089_v57 }
  0x82   : > { %579 = vmatmul.f32.gmra.mxu2 %v426_v62 }
  0x83   : > { %620 = vmatmul.f32.gmra.mxu3 %v427_v63 }
  0x84   : > { %497 = vmatmul.f32.gmra.mxu0 %v2098_v60  ;;  %538 = vmatmul.f32.gmra.mxu1 %v2101_v61 }
  0xc9   : > { %v477_v1 = vpop.f32.mrf.mxu0  ;;  %v518_v2 = vpop.f32.mrf.mxu1 }
  0xca   : > { %v519_v3 = vadd.f32 %v518_v2, %v477_v1 }
  0xcc   : > { %v628_v4 = vmul.f32 %v2111_v0, %v519_v3 }
  0xcd   : > { %v559_v5 = vpop.f32.mrf.mxu2 }
  0xce   : > { %v600_v6 = vpop.f32.mrf.mxu3  ;;  %v644_v7 = vmul.f32 %v628_v4, %v628_v4 }
  0xcf   : > { %v601_v8 = vadd.f32 %v600_v6, %v559_v5 }
  0xd1   : > { %v636_v9 = vmul.f32 %v2111_v0, %v601_v8  ;;  %v480_v10 = vpop.f32.mrf.mxu0  ;;  %v521_v11 = vpop.f32.mrf.mxu1 }
  0xd2   : > { %v522_v12 = vadd.f32 %v521_v11, %v480_v10 }
  0xd3   : > { %v652_v13 = vsub.f32 %v636_v9, %v644_v7 }
  0xd4   : > { %v629_v14 = vmul.f32 %v2111_v0, %v522_v12 }
  0xd5   : > { %v2116_v15 = vmax.f32 %v652_v13, 0.0  ;;  %v562_v16 = vpop.f32.mrf.mxu2 }
  0xd6   : > { %v603_v17 = vpop.f32.mrf.mxu3  ;;  %v645_v18 = vmul.f32 %v629_v14, %v629_v14 }
  0xd7   : > { %v604_v19 = vadd.f32 %v603_v17, %v562_v16  ;;  %708 = vrot.lane.b32.xlu0 %v2116_v15, %s1764_s11 }
  0xd9   : > { %v637_v20 = vmul.f32 %v2111_v0, %v604_v19  ;;  %v483_v21 = vpop.f32.mrf.mxu0  ;;  %v524_v22 = vpop.f32.mrf.mxu1 }
  0xda   : > { %v525_v23 = vadd.f32 %v524_v22, %v483_v21 }
  0xdb   : > { %v653_v24 = vsub.f32 %v637_v20, %v645_v18 }
  0xdc   : > { %v630_v25 = vmul.f32 %v2111_v0, %v525_v23 }
  0xdd   : > { %v2122_v26 = vmax.f32 %v653_v24, 0.0  ;;  %v565_v27 = vpop.f32.mrf.mxu2 }
  0xde   : > { %v606_v30 = vpop.f32.mrf.mxu3  ;;  %v646_v31 = vmul.f32 %v630_v25, %v630_v25 }
  0xdf   : > { %v607_v32 = vadd.f32 %v606_v30, %v565_v27  ;;  %710 = vrot.lane.b32.xlu0 %v2122_v26, %s1764_s11 }
  0xe1   : > { %v638_v33 = vmul.f32 %v2111_v0, %v607_v32  ;;  %v486_v34 = vpop.f32.mrf.mxu0  ;;  %v527_v35 = vpop.f32.mrf.mxu1 }
  0xe2   : > { %v528_v38 = vadd.f32 %v527_v35, %v486_v34 }
  0xe3   : > { %v654_v39 = vsub.f32 %v638_v33, %v646_v31 }
  0xe4   : > { %v631_v42 = vmul.f32 %v2111_v0, %v528_v38 }
  0xe5   : > { %v662_v43 = vmax.f32 %v654_v39, 0.0  ;;  %v568_v46 = vpop.f32.mrf.mxu2 }
  0xe6   : > { %v609_v47 = vpop.f32.mrf.mxu3  ;;  %v647_v50 = vmul.f32 %v631_v42, %v631_v42 }
  0xe7   : > { %v610_v51 = vadd.f32 %v609_v47, %v568_v46  ;;  %712 = vrot.lane.b32.xlu1 %v662_v43, %s1764_s11 }
  0xe9   : > { %v639_v54 = vmul.f32 %v2111_v0, %v610_v51  ;;  %v489_v55 = vpop.f32.mrf.mxu0  ;;  %v530_v58 = vpop.f32.mrf.mxu1 }
  0xea   : > { %v531_v59 = vadd.f32 %v530_v58, %v489_v55 }
  0xeb   : > { %v655_v62 = vsub.f32 %v639_v54, %v647_v50 }
  0xec   : > { %v632_v63 = vmul.f32 %v2111_v0, %v531_v59 }
  0xed   : > { %v663_v1 = vmax.f32 %v655_v62, 0.0  ;;  %v571_v2 = vpop.f32.mrf.mxu2 }
  0xee   : > { %v612_v3 = vpop.f32.mrf.mxu3  ;;  %v648_v4 = vmul.f32 %v632_v63, %v632_v63 }
  0xef   : > { %v613_v5 = vadd.f32 %v612_v3, %v571_v2  ;;  %714 = vrot.lane.b32.xlu1 %v663_v1, %s1764_s11  ;;  %v771_v2 = vld [vmem:[%s2283_s5 + $0x38] sm:$0xff] }
  0xf0   : > { %791 = vmatpush.msrb.mxu0 %v771_v2  ;;  %1437 = vmatpush.msrb.mxu2 %v771_v2  ;;  %v767_v3 = vld [vmem:[%s2283_s5 + $0x18] sm:$0xff] }
  0xf1   : > { %v640_v6 = vmul.f32 %v2111_v0, %v613_v5  ;;  %v492_v7 = vpop.f32.mrf.mxu0  ;;  %v533_v8 = vpop.f32.mrf.mxu1  ;;  %v765_v5 = vld [vmem:[%s2283_s5 + $0x8] sm:$0xff] }
  0xf2   : > { %v534_v9 = vadd.f32 %v533_v8, %v492_v7 }
  0xf3   : > { %v656_v10 = vsub.f32 %v640_v6, %v648_v4  ;;  %v766_v4 = vld [vmem:[%s2283_s5 + $0x10] sm:$0xff]  ;;  %v764_v6 = vld [vmem:[%s2283_s5] sm:$0xff] }
  0xf4   : > { %v633_v11 = vmul.f32 %v2111_v0, %v534_v9 }
  0xf5   : > { %v664_v12 = vmax.f32 %v656_v10, 0.0  ;;  %v574_v13 = vpop.f32.mrf.mxu2  ;;  %v851_v10 = vld [vmem:[#allocation8 + $0x38] sm:$0xff] }
  0xf6   : > { %v615_v14 = vpop.f32.mrf.mxu3  ;;  %v649_v16 = vmul.f32 %v633_v11, %v633_v11  ;;  %870 = vmatpush.msrb.mxu1 %v851_v10  ;;  %1445 = vmatpush.msrb.mxu3 %v851_v10  ;;  %v850_v11 = vld [vmem:[#allocation8 + $0x30] sm:$0xff] }
  0xf7   : > { %v616_v17 = vadd.f32 %v615_v14, %v574_v13  ;;  %716 = vrot.lane.b32.xlu2 %v664_v12, %s1764_s11  ;;  %v848_v13 = vld [vmem:[#allocation8 + $0x20] sm:$0xff]  ;;  %v847_v14 = vld [vmem:[#allocation8 + $0x18] sm:$0xff] }
  0xf8   : > { %871 = vmatpush.msrb.mxu1 %v850_v11  ;;  %1446 = vmatpush.msrb.mxu3 %v850_v11 }
  0xf9   : > { %v641_v18 = vmul.f32 %v2111_v0, %v616_v17  ;;  %v495_v19 = vpop.f32.mrf.mxu0  ;;  %v536_v20 = vpop.f32.mrf.mxu1  ;;  %v845_v17 = vld [vmem:[#allocation8 + $0x8] sm:$0xff] }
  0xfa   : > { %v537_v21 = vadd.f32 %v536_v20, %v495_v19 }
  0xfb   : > { %v657_v22 = vsub.f32 %v641_v18, %v649_v16  ;;  %v846_v16 = vld [vmem:[#allocation8 + $0x10] sm:$0xff]  ;;  %v844_v18 = vld [vmem:[#allocation8] sm:$0xff] }
  0xfc   : > { %v634_v23 = vmul.f32 %v2111_v0, %v537_v21 }
  0xfd   : > { %v665_v24 = vmax.f32 %v657_v22, 0.0  ;;  %v577_v25 = vpop.f32.mrf.mxu2 }
  0xfe   : > { %v618_v27 = vpop.f32.mrf.mxu3  ;;  %v650_v30 = vmul.f32 %v634_v23, %v634_v23  ;;  %v1542_v23 = vld [vmem:[%s2284_s6] ss:$0 sm:$0xff] }
  0xff   : > { %718 = vrot.lane.b32.xlu2 %v665_v24, %s1764_s11  ;;  %v619_v31 = vadd.f32 %v618_v27, %v577_v25 }
 0x101   : > { %v642_v32 = vmul.f32 %v2111_v0, %v619_v31  ;;  %v498_v33 = vpop.f32.mrf.mxu0  ;;  %v539_v34 = vpop.f32.mrf.mxu1 }
 0x102   : > { %v540_v35 = vadd.f32 %v539_v34, %v498_v33 }
 0x103   : > { %v658_v38 = vsub.f32 %v642_v32, %v650_v30 }
 0x104   : > { %v635_v39 = vmul.f32 %v2111_v0, %v540_v35 }
 0x105   : > { %v666_v42 = vmax.f32 %v658_v38, 0.0  ;;  %v580_v46 = vpop.f32.mrf.mxu2 }
 0x106   : > { %v621_v47 = vpop.f32.mrf.mxu3  ;;  %v651_v50 = vmul.f32 %v635_v39, %v635_v39 }
 0x107   : > { %v622_v51 = vadd.f32 %v621_v47, %v580_v46  ;;  %720 = vrot.lane.b32.xlu0 %v666_v42, %s1764_s11 }
 0x109   : > { %v643_v54 = vmul.f32 %v2111_v0, %v622_v51 }
 0x10b   : > { %v659_v55 = vsub.f32 %v643_v54, %v651_v50 }
 0x10d   : > { %v667_v58 = vmax.f32 %v659_v55, 0.0 }
 0x10f   : > { %722 = vrot.lane.b32.xlu1 %v667_v58, %s1764_s11  ;;  %s1700_s11 = scalar_lea.hbm %s2287_s9, 256 }
 0x110   : > { %p1702_p4 = scmp.lt.s32.totalorder %s1700_s11, %s1696_s3 }
 0x112   : > { %p1703_p7 = por %p1702_p4, %p1701_p3 }
 0x114   : > { %p1704_p8 = pnand %p1703_p7, %p1699_p2 }
 0x125   : > { %668 = vxpose.xlu2.b32.start [1/8] (short) (narrow) %v2116_v15, 16  ;;  %v770_v15 = vld [vmem:[%s2283_s5 + $0x30] sm:$0xff] }
 0x126   : > { %792 = vmatpush.msrb.mxu0 %v770_v15  ;;  %1438 = vmatpush.msrb.mxu2 %v770_v15 }
 0x12d   : > { %669 = vxpose.xlu2.b32.cont [2/8] (short) (narrow) %v2122_v26, 16  ;;  %v769_v26 = vld [vmem:[%s2283_s5 + $0x28] sm:$0xff] }
 0x12e   : > { %793 = vmatpush.msrb.mxu0 %v769_v26  ;;  %1439 = vmatpush.msrb.mxu2 %v769_v26 }
 0x135   : > { %670 = vxpose.xlu2.b32.cont [3/8] (short) (narrow) %v662_v43, 16  ;;  %v768_v43 = vld [vmem:[%s2283_s5 + $0x20] sm:$0xff] }
 0x136   : > { %794 = vmatpush.msrb.mxu0 %v768_v43  ;;  %1440 = vmatpush.msrb.mxu2 %v768_v43 }
 0x138   : > { %795 = vmatpush.msrb.mxu0 %v767_v3  ;;  %1441 = vmatpush.msrb.mxu2 %v767_v3 }
 0x13a   : > { %796 = vmatpush.msrb.mxu0 %v766_v4  ;;  %1442 = vmatpush.msrb.mxu2 %v766_v4 }
 0x13c   : > { %797 = vmatpush.msrb.mxu0 %v765_v5  ;;  %1443 = vmatpush.msrb.mxu2 %v765_v5  ;;  %v1543_v5 = vld [vmem:[%s2286_s8] ss:$0 sm:$0xff] }
 0x13d   : > { %671 = vxpose.xlu2.b32.cont [4/8] (short) (narrow) %v663_v1, 16 }
 0x13e   : > { %798 = vmatpush.msrb.mxu0 %v764_v6  ;;  %1444 = vmatpush.msrb.mxu2 %v764_v6 }
 0x145   : > { %672 = vxpose.xlu2.b32.cont [5/8] (short) (narrow) %v664_v12, 16  ;;  %v849_v12 = vld [vmem:[#allocation8 + $0x28] sm:$0xff] }
 0x146   : > { %872 = vmatpush.msrb.mxu1 %v849_v12  ;;  %1447 = vmatpush.msrb.mxu3 %v849_v12 }
 0x148   : > { %873 = vmatpush.msrb.mxu1 %v848_v13  ;;  %1448 = vmatpush.msrb.mxu3 %v848_v13 }
 0x149   : > { %v709_v59 = vpop.permute.xlu0 %708 }
 0x14a   : > { %732 = vxpose.xlu0.b32.start [1/8] (short) (narrow) %v709_v59, 16  ;;  %874 = vmatpush.msrb.mxu1 %v847_v14 }
 0x14b   : > { %1449 = vmatpush.msrb.mxu3 %v847_v14 }
 0x14c   : > { %875 = vmatpush.msrb.mxu1 %v846_v16 }
 0x14d   : > { %673 = vxpose.xlu2.b32.cont [6/8] (short) (narrow) %v665_v24, 16  ;;  %1450 = vmatpush.msrb.mxu3 %v846_v16 }
 0x14e   : > { %876 = vmatpush.msrb.mxu1 %v845_v17 }
 0x14f   : > { %1451 = vmatpush.msrb.mxu3 %v845_v17  ;;  %v989_v17 = vld [vmem:[#allocation5 + $0x10] sm:$0xff] }
 0x150   : > { %877 = vmatpush.msrb.mxu1 %v844_v18  ;;  %1030 = vmatpush.msra.mxu2 %v989_v17 }
 0x151   : > { %v711_v62 = vpop.permute.xlu0 %710  ;;  %v717_v1 = vpop.permute.xlu2 %716  ;;  %1452 = vmatpush.msrb.mxu3 %v844_v18  ;;  %v990_v18 = vld [vmem:[#allocation5 + $0x18] sm:$0xff] }
 0x152   : > { %733 = vxpose.xlu0.b32.cont [2/8] (short) (narrow) %v711_v62, 16 }
 0x153   : > { %1071 = vmatpush.msra.mxu3 %v990_v18 }
 0x155   : > { %674 = vxpose.xlu2.b32.cont [7/8] (short) (narrow) %v666_v42, 16 }
 0x159   : > { %v713_v63 = vpop.permute.xlu1 %712  ;;  %v719_v7 = vpop.permute.xlu2 %718 }
 0x15a   : > { %734 = vxpose.xlu0.b32.cont [3/8] (short) (narrow) %v713_v63, 16 }
 0x15d   : > { %675 = vxpose.xlu2.b32.end [8/8] (short) (narrow) %v667_v58, 16 }
 0x161   : > { %v715_v0 = vpop.permute.xlu1 %714 }
 0x162   : > { %735 = vxpose.xlu0.b32.cont [4/8] (short) (narrow) %v715_v0, 16 }
 0x16a   : > { %736 = vxpose.xlu0.b32.cont [5/8] (short) (narrow) %v717_v1, 16 }
 0x172   : > { %737 = vxpose.xlu0.b32.cont [6/8] (short) (narrow) %v719_v7, 16 }
 0x179   : > { %v721_v8 = vpop.permute.xlu0 %720 }
 0x17a   : > { %738 = vxpose.xlu0.b32.cont [7/8] (short) (narrow) %v721_v8, 16 }
 0x181   : > { %v723_v9 = vpop.permute.xlu1 %722 }
 0x182   : > { %739 = vxpose.xlu0.b32.end [8/8] (short) (narrow) %v723_v9, 16 }
 0x1be   : > { %v684_v19 = vpop.trf.xlu2 }
 0x1bf   : > { %1390 = vmatmul.msk.f32.vlgmr.msrb.gmra.mxu0 %vm776_vm0, %v684_v19  ;;  %v987_v19 = vld [vmem:[#allocation5] sm:$0xff] }
 0x1c0   : > { %1031 = vmatpush.msra.mxu2 %v987_v19 }
 0x1c6   : > { %v685_v20 = vpop.trf.xlu2 }
 0x1c7   : > { %1391 = vmatmul.msk.f32.vlgmr.msrb.gmra.mxu2 %vm776_vm0, %v685_v20 }
 0x1ee   : > { %v748_v21 = vpop.trf.xlu0 }
 0x1ef   : > { %1394 = vmatmul.msk.f32.vlgmr.msrb.gmra.mxu1 %vm776_vm0, %v748_v21  ;;  %v988_v21 = vld [vmem:[#allocation5 + $0x8] sm:$0xff] }
 0x1f0   : > { %1072 = vmatpush.msra.mxu3 %v988_v21 }
 0x1f6   : > { %v749_v22 = vpop.trf.xlu0 }
 0x1f7   : > { %1395 = vmatmul.msk.f32.vlgmr.msrb.gmra.mxu3 %vm776_vm0, %v749_v22 }
 0x23c   : > { %v800_v24 = vpop.f32.mrf.mxu0 }
 0x23d   : > { %v801_v25 = vadd.f32 %v1542_v23, %v800_v24 }
 0x23f   : > { %v1392_v27 = vmul.f32 -1.442695, %v801_v25 }
 0x241   : > { %1544 = vpow2.f32 %v1392_v27 }
 0x247   : > { %v1545_v30 = vpop.eup %1544 }
 0x248   : > { %v812_v31 = vadd.f32 1.0, %v1545_v30 }
 0x24a   : > { %1546 = vrcp.f32 %v812_v31  ;;  %v803_v32 = vpop.f32.mrf.mxu2  ;;  %v825_v42 = vand.u32 2147483648, %v812_v31  ;;  %v823_v50 = vand.u32 2147483647, %v812_v31  ;;  %vm819_vm2 = vweird.f32 %v812_v31 }
 0x24b   : > { %v804_v33 = vadd.f32 %v1542_v23, %v803_v32 }
 0x24c   : > { %v826_v55 = vor.u32 1.1754944e-38, %v825_v42  ;;  %vm824_vm4 = vcmp.eq.f32.partialorder %v823_v50, 8.507059e+37 }
 0x24d   : > { %v1393_v34 = vmul.f32 -1.442695, %v804_v33 }
 0x24f   : > { %1548 = vpow2.f32 %v1393_v34 }
 0x250   : > { %v1547_v35 = vpop.eup %1546 }
 0x251   : > { %v815_v38 = vmul.f32 %v1547_v35, %v812_v31  ;;  %vm820_vm1 = vweird.f32 %v1547_v35 }
 0x252   : > { %vm821_vm3 = vmor %vm819_vm2, %vm820_vm1  ;;  %vm991_vm1 = vcmask 130048  }
 0x253   : > { %v816_v39 = vsub.f32 1.0, %v815_v38 }
 0x255   : > { %v1549_v46 = vpop.eup %1548  ;;  %v817_v47 = vmul.f32 %v1547_v35, %v816_v39 }
 0x256   : > { %v813_v51 = vadd.f32 1.0, %v1549_v46 }
 0x257   : > { %v818_v54 = vadd.f32 %v1547_v35, %v817_v47 }
 0x258   : > { %1550 = vrcp.f32 %v813_v51  ;;  %v840_v2 = vand.u32 2147483648, %v813_v51  ;;  %v838_v26 = vand.u32 2147483647, %v813_v51  ;;  %vm834_vm6 = vweird.f32 %v813_v51 }
 0x259   : > { %v822_v58 = vsel %vm821_vm3, %v1547_v35, %v818_v54 }
 0x25a   : > { %v827_v59 = vsel %vm824_vm4, %v826_v55, %v822_v58  ;;  %v841_v1 = vor.u32 1.1754944e-38, %v840_v2  ;;  %vm839_vm8 = vcmp.eq.f32.partialorder %v838_v26, 8.507059e+37  ;;  %v1098_v2 = vld [vmem:[#allocation7] sm:$0xff] }
 0x25b   : > { %923 = vxpose.xlu1.b32.start [1/2] (short) (narrow) %v827_v59, 64 }
 0x25e   : > { %v1551_v62 = vpop.eup %1550 }
 0x25f   : > { %v830_v63 = vmul.f32 %v1551_v62, %v813_v51  ;;  %vm835_vm5 = vweird.f32 %v1551_v62 }
 0x260   : > { %vm836_vm7 = vmor %vm834_vm6, %vm835_vm5 }
 0x261   : > { %v831_v0 = vsub.f32 1.0, %v830_v63  ;;  %v1100_v63 = vld [vmem:[#allocation7 + $0x10] sm:$0xff] }
 0x262   : > { %1140 = vmatpush.msra.mxu0 %v1100_v63 }
 0x263   : > { %v832_v15 = vmul.f32 %v1551_v62, %v831_v0  ;;  %v1101_v0 = vld [vmem:[#allocation7 + $0x18] sm:$0xff] }
 0x264   : > { %1181 = vmatpush.msra.mxu1 %v1101_v0  ;;  %1141 = vmatpush.msra.mxu0 %v1098_v2 }
 0x265   : > { %v833_v43 = vadd.f32 %v1551_v62, %v832_v15  ;;  %v1099_v15 = vld [vmem:[#allocation7 + $0x8] sm:$0xff] }
 0x266   : > { %1182 = vmatpush.msra.mxu1 %v1099_v15 }
 0x267   : > { %v837_v3 = vsel %vm836_vm7, %v1551_v62, %v833_v43 }
 0x268   : > { %v842_v4 = vsel %vm839_vm8, %v841_v1, %v837_v3 }
 0x269   : > { %924 = vxpose.xlu1.b32.end [2/2] (short) (narrow) %v842_v4, 64 }
 0x26c   : > { %v879_v6 = vpop.f32.mrf.mxu1 }
 0x26d   : > { %v880_v7 = vadd.f32 %v1543_v5, %v879_v6 }
 0x26f   : > { %v1396_v8 = vmul.f32 -1.442695, %v880_v7 }
 0x271   : > { %1552 = vpow2.f32 %v1396_v8 }
 0x277   : > { %v1553_v11 = vpop.eup %1552 }
 0x278   : > { %v891_v13 = vadd.f32 1.0, %v1553_v11 }
 0x27a   : > { %v882_v9 = vpop.f32.mrf.mxu3  ;;  %vm898_vm9 = vweird.f32 %v891_v13  ;;  %v904_v30 = vand.u32 2147483648, %v891_v13  ;;  %v902_v32 = vand.u32 2147483647, %v891_v13 }
 0x27b   : > { %v883_v10 = vadd.f32 %v1543_v5, %v882_v9 }
 0x27c   : > { %v905_v34 = vor.u32 1.1754944e-38, %v904_v30  ;;  %vm903_vm12 = vcmp.eq.f32.partialorder %v902_v32, 8.507059e+37 }
 0x27d   : > { %v1397_v12 = vmul.f32 -1.442695, %v883_v10 }
 0x27f   : > { %1554 = vpow2.f32 %v1397_v12 }
 0x280   : > { %1556 = vrcp.f32 %v891_v13 }
 0x285   : > { %v1555_v14 = vpop.eup %1554 }
 0x286   : > { %v892_v16 = vadd.f32 1.0, %v1555_v14  ;;  %v1557_v20 = vpop.eup %1556 }
 0x287   : > { %v894_v22 = vmul.f32 %v1557_v20, %v891_v13  ;;  %vm899_vm10 = vweird.f32 %v1557_v20 }
 0x288   : > { %1558 = vrcp.f32 %v892_v16  ;;  %vm900_vm11 = vmor %vm898_vm9, %vm899_vm10  ;;  %vm913_vm13 = vweird.f32 %v892_v16  ;;  %v919_v42 = vand.u32 2147483648, %v892_v16  ;;  %v917_v47 = vand.u32 2147483647, %v892_v16 }
 0x289   : > { %v895_v23 = vsub.f32 1.0, %v894_v22 }
 0x28a   : > { %v920_v50 = vor.u32 1.1754944e-38, %v919_v42  ;;  %vm918_vm0 = vcmp.eq.f32.partialorder %v917_v47, 8.507059e+37 }
 0x28b   : > { %v896_v25 = vmul.f32 %v1557_v20, %v895_v23 }
 0x28d   : > { %v897_v31 = vadd.f32 %v1557_v20, %v896_v25 }
 0x28e   : > { %v1559_v24 = vpop.eup %1558 }
 0x28f   : > { %v909_v27 = vmul.f32 %v1559_v24, %v892_v16  ;;  %v901_v35 = vsel %vm900_vm11, %v1557_v20, %v897_v31  ;;  %vm914_vm14 = vweird.f32 %v1559_v24 }
 0x290   : > { %v906_v39 = vsel %vm903_vm12, %v905_v34, %v901_v35  ;;  %vm915_vm15 = vmor %vm913_vm13, %vm914_vm14 }
 0x291   : > { %v910_v33 = vsub.f32 1.0, %v909_v27 }
 0x293   : > { %v911_v38 = vmul.f32 %v1559_v24, %v910_v33 }
 0x295   : > { %v912_v46 = vadd.f32 %v1559_v24, %v911_v38 }
 0x297   : > { %v916_v51 = vsel %vm915_vm15, %v1559_v24, %v912_v46 }
 0x298   : > { %v921_v54 = vsel %vm918_vm0, %v920_v50, %v916_v51 }
 0x2a1   : > { %955 = vxpose.xlu1.b32.start [1/2] (short) (narrow) %v906_v39, 64 }
 0x2a9   : > { %956 = vxpose.xlu1.b32.end [2/2] (short) (narrow) %v921_v54, 64 }
 0x305   : > { %v939_v55 = vpop.trf.xlu1 }
 0x306   : > { %1398 = vmatmul.msk.f32.vlgmr.msra.gmra.mxu2 %vm991_vm1, %v939_v55  ;;  %1406 = vmatmul.msk.f32.vlgmr.msra.gmra.mxu3 %vm991_vm1, %v939_v55 }
 0x30d   : > { %v940_v58 = vpop.trf.xlu1 }
 0x30e   : > { %1399 = vmatmul.msk.f32.gmra.mxu2 %vm991_vm1, %v940_v58  ;;  %1407 = vmatmul.msk.f32.gmra.mxu3 %vm991_vm1, %v940_v58 }
 0x315   : > { %v941_v59 = vpop.trf.xlu1 }
 0x316   : > { %1400 = vmatmul.msk.f32.gmra.mxu2 %vm991_vm1, %v941_v59  ;;  %1408 = vmatmul.msk.f32.gmra.mxu3 %vm991_vm1, %v941_v59 }
 0x31d   : > { %v942_v62 = vpop.trf.xlu1 }
 0x31e   : > { %1401 = vmatmul.msk.f32.gmra.mxu2 %vm991_vm1, %v942_v62  ;;  %1409 = vmatmul.msk.f32.gmra.mxu3 %vm991_vm1, %v942_v62 }
 0x325   : > { %v943_v26 = vpop.trf.xlu1 }
 0x326   : > { %1402 = vmatmul.msk.f32.gmra.mxu2 %vm991_vm1, %v943_v26  ;;  %1410 = vmatmul.msk.f32.gmra.mxu3 %vm991_vm1, %v943_v26 }
 0x32d   : > { %v944_v43 = vpop.trf.xlu1 }
 0x32e   : > { %1403 = vmatmul.msk.f32.gmra.mxu2 %vm991_vm1, %v944_v43  ;;  %1411 = vmatmul.msk.f32.gmra.mxu3 %vm991_vm1, %v944_v43 }
 0x335   : > { %v945_v1 = vpop.trf.xlu1 }
 0x336   : > { %1404 = vmatmul.msk.f32.gmra.mxu2 %vm991_vm1, %v945_v1  ;;  %1412 = vmatmul.msk.f32.gmra.mxu3 %vm991_vm1, %v945_v1 }
 0x33d   : > { %v946_v3 = vpop.trf.xlu1 }
 0x33e   : > { %1405 = vmatmul.msk.f32.gmra.mxu2 %vm991_vm1, %v946_v3  ;;  %1413 = vmatmul.msk.f32.gmra.mxu3 %vm991_vm1, %v946_v3 }
 0x345   : > { %v971_v4 = vpop.trf.xlu1 }
 0x346   : > { %1414 = vmatmul.msk.f32.vlgmr.msra.gmra.mxu0 %vm991_vm1, %v971_v4  ;;  %1422 = vmatmul.msk.f32.vlgmr.msra.gmra.mxu1 %vm991_vm1, %v971_v4 }
 0x34d   : > { %v972_v5 = vpop.trf.xlu1 }
 0x34e   : > { %1415 = vmatmul.msk.f32.gmra.mxu0 %vm991_vm1, %v972_v5  ;;  %1423 = vmatmul.msk.f32.gmra.mxu1 %vm991_vm1, %v972_v5 }
 0x355   : > { %v973_v6 = vpop.trf.xlu1 }
 0x356   : > { %1416 = vmatmul.msk.f32.gmra.mxu0 %vm991_vm1, %v973_v6  ;;  %1424 = vmatmul.msk.f32.gmra.mxu1 %vm991_vm1, %v973_v6 }
 0x35d   : > { %v974_v7 = vpop.trf.xlu1 }
 0x35e   : > { %1417 = vmatmul.msk.f32.gmra.mxu0 %vm991_vm1, %v974_v7  ;;  %1425 = vmatmul.msk.f32.gmra.mxu1 %vm991_vm1, %v974_v7 }
 0x365   : > { %v975_v8 = vpop.trf.xlu1 }
 0x366   : > { %1418 = vmatmul.msk.f32.gmra.mxu0 %vm991_vm1, %v975_v8  ;;  %1426 = vmatmul.msk.f32.gmra.mxu1 %vm991_vm1, %v975_v8 }
 0x36d   : > { %v976_v9 = vpop.trf.xlu1 }
 0x36e   : > { %1419 = vmatmul.msk.f32.gmra.mxu0 %vm991_vm1, %v976_v9  ;;  %1427 = vmatmul.msk.f32.gmra.mxu1 %vm991_vm1, %v976_v9 }
 0x375   : > { %v977_v10 = vpop.trf.xlu1 }
 0x376   : > { %1420 = vmatmul.msk.f32.gmra.mxu0 %vm991_vm1, %v977_v10  ;;  %1428 = vmatmul.msk.f32.gmra.mxu1 %vm991_vm1, %v977_v10 }
 0x37d   : > { %v978_v11 = vpop.trf.xlu1 }
 0x37e   : > { %1421 = vmatmul.msk.f32.gmra.mxu0 %vm991_vm1, %v978_v11  ;;  %1429 = vmatmul.msk.f32.gmra.mxu1 %vm991_vm1, %v978_v11 }
 0x389   : > { %v1033_v12 = vpop.f32.mrf.mxu2  ;;  %v1074_v13 = vpop.f32.mrf.mxu3 }
 0x38a   : > { %v1208_v17 = vmul.f32 %v1033_v12, %v2004_v28  ;;  %v1209_v18 = vmul.f32 %v1074_v13, %v2007_v29 }
 0x391   : > { %v1036_v14 = vpop.f32.mrf.mxu2  ;;  %v1077_v16 = vpop.f32.mrf.mxu3 }
 0x392   : > { %v1210_v25 = vmul.f32 %v1036_v14, %v2026_v36  ;;  %v1211_v28 = vmul.f32 %v1077_v16, %v2029_v37 }
 0x399   : > { %v1039_v21 = vpop.f32.mrf.mxu2  ;;  %v1080_v22 = vpop.f32.mrf.mxu3 }
 0x39a   : > { %v1212_v34 = vmul.f32 %v1039_v21, %v2038_v40  ;;  %v1213_v35 = vmul.f32 %v1080_v22, %v2041_v41 }
 0x3a1   : > { %v1042_v32 = vpop.f32.mrf.mxu2  ;;  %v1083_v33 = vpop.f32.mrf.mxu3 }
 0x3a2   : > { %v1214_v47 = vmul.f32 %v1042_v32, %v2050_v44  ;;  %v1215_v50 = vmul.f32 %v1083_v33, %v2053_v45 }
 0x3a9   : > { %v1045_v37 = vpop.f32.mrf.mxu2  ;;  %v1086_v46 = vpop.f32.mrf.mxu3 }
 0x3aa   : > { %v1216_v41 = vmul.f32 %v1045_v37, %v2062_v48  ;;  %v1217_v58 = vmul.f32 %v1086_v46, %v2065_v49 }
 0x3b1   : > { %v1048_v59 = vpop.f32.mrf.mxu2  ;;  %v1089_v62 = vpop.f32.mrf.mxu3 }
 0x3b2   : > { %v1218_v45 = vmul.f32 %v1048_v59, %v2074_v52  ;;  %v1219_v15 = vmul.f32 %v1089_v62, %v2077_v53 }
 0x3b9   : > { %v1051_v1 = vpop.f32.mrf.mxu2  ;;  %v1092_v3 = vpop.f32.mrf.mxu3 }
 0x3ba   : > { %v1220_v4 = vmul.f32 %v1051_v1, %v2086_v56  ;;  %v1221_v5 = vmul.f32 %v1092_v3, %v2089_v57 }
 0x3c1   : > { %v1054_v8 = vpop.f32.mrf.mxu2  ;;  %v1095_v9 = vpop.f32.mrf.mxu3 }
 0x3c2   : > { %v1222_v56 = vmul.f32 %v1054_v8, %v2098_v60  ;;  %v1223_v57 = vmul.f32 %v1095_v9, %v2101_v61 }
 0x3c3   : > { %v1143_v19 = vpop.f32.mrf.mxu0  ;;  %v1184_v20 = vpop.f32.mrf.mxu1 }
 0x3c4   : > { %v1224_v23 = vmul.f32 %v1208_v17, %v1143_v19  ;;  %v1225_v24 = vmul.f32 %v1209_v18, %v1184_v20 }
 0x3c6   : > { %1240 = vst [vmem:[%s2212_s16] sm:$0xff] %v1224_v23 }
 0x3c7   : > { %1241 = vst [vmem:[%s2212_s16 + $0x8] sm:$0xff] %v1225_v24 }
 0x3cb   : > { %v1146_v29 = vpop.f32.mrf.mxu0  ;;  %v1187_v27 = vpop.f32.mrf.mxu1 }
 0x3cc   : > { %v1226_v30 = vmul.f32 %v1210_v25, %v1146_v29  ;;  %v1227_v31 = vmul.f32 %v1211_v28, %v1187_v27 }
 0x3ce   : > { %1242 = vst [vmem:[%s2212_s16 + $0x10] sm:$0xff] %v1226_v30 }
 0x3cf   : > { %1243 = vst [vmem:[%s2212_s16 + $0x18] sm:$0xff] %v1227_v31 }
 0x3d3   : > { %v1149_v38 = vpop.f32.mrf.mxu0  ;;  %v1190_v36 = vpop.f32.mrf.mxu1 }
 0x3d4   : > { %v1228_v39 = vmul.f32 %v1212_v34, %v1149_v38  ;;  %v1229_v42 = vmul.f32 %v1213_v35, %v1190_v36 }
 0x3d6   : > { %1244 = vst [vmem:[%s2212_s16 + $0x20] sm:$0xff] %v1228_v39 }
 0x3d7   : > { %1245 = vst [vmem:[%s2212_s16 + $0x28] sm:$0xff] %v1229_v42 }
 0x3db   : > { %v1152_v51 = vpop.f32.mrf.mxu0  ;;  %v1193_v40 = vpop.f32.mrf.mxu1 }
 0x3dc   : > { %v1230_v54 = vmul.f32 %v1214_v47, %v1152_v51  ;;  %v1231_v55 = vmul.f32 %v1215_v50, %v1193_v40 }
 0x3de   : > { %1246 = vst [vmem:[%s2212_s16 + $0x30] sm:$0xff] %v1230_v54 }
 0x3df   : > { %1247 = vst [vmem:[%s2212_s16 + $0x38] sm:$0xff] %v1231_v55 }
 0x3e3   : > { %v1155_v63 = vpop.f32.mrf.mxu0  ;;  %v1196_v44 = vpop.f32.mrf.mxu1 }
 0x3e4   : > { %v1232_v0 = vmul.f32 %v1216_v41, %v1155_v63  ;;  %v1233_v2 = vmul.f32 %v1217_v58, %v1196_v44 }
 0x3e6   : > { %1248 = vst [vmem:[%s2212_s16 + $0x40] sm:$0xff] %v1232_v0 }
 0x3e7   : > { %1249 = vst [vmem:[%s2212_s16 + $0x48] sm:$0xff] %v1233_v2 }
 0x3eb   : > { %v1158_v26 = vpop.f32.mrf.mxu0  ;;  %v1199_v48 = vpop.f32.mrf.mxu1 }
 0x3ec   : > { %v1234_v43 = vmul.f32 %v1218_v45, %v1158_v26  ;;  %v1235_v49 = vmul.f32 %v1219_v15, %v1199_v48 }
 0x3ee   : > { %1250 = vst [vmem:[%s2212_s16 + $0x50] sm:$0xff] %v1234_v43 }
 0x3ef   : > { %1251 = vst [vmem:[%s2212_s16 + $0x58] sm:$0xff] %v1235_v49 }
 0x3f3   : > { %v1161_v6 = vpop.f32.mrf.mxu0  ;;  %v1202_v7 = vpop.f32.mrf.mxu1 }
 0x3f4   : > { %v1236_v52 = vmul.f32 %v1220_v4, %v1161_v6  ;;  %v1237_v53 = vmul.f32 %v1221_v5, %v1202_v7 }
 0x3f6   : > { %1252 = vst [vmem:[%s2212_s16 + $0x60] sm:$0xff] %v1236_v52 }
 0x3f7   : > { %1253 = vst [vmem:[%s2212_s16 + $0x68] sm:$0xff] %v1237_v53 }
 0x3fb   : > { %v1164_v10 = vpop.f32.mrf.mxu0  ;;  %v1205_v11 = vpop.f32.mrf.mxu1 }
 0x3fc   : > { %v1238_v12 = vmul.f32 %v1222_v56, %v1164_v10  ;;  %v1239_v13 = vmul.f32 %v1223_v57, %v1205_v11 }
 0x3fe   : > { %1254 = vst [vmem:[%s2212_s16 + $0x70] sm:$0xff] %v1238_v12 }
 0x3ff   : > { %1255 = vst [vmem:[%s2212_s16 + $0x78] sm:$0xff] %v1239_v13 }
 0x400   : > { %1707 = shalt.err (!%p1704_p8)
}
 0x401   : > { %s1765_s21 = smov 256   ;;  %s1766_s27 = smov 16  }
 0x402   : > { %1469 = dma.vmem_to_hbm [thread:$0]  (%p1855_p5), %s1270_s29, 2048, %s1272_s24, %s1257_s13, %s1765_s21, %s1765_s21, %s1766_s27  }
 0x403 PF: > { %p1496_p9 = scmp.ge.s32.totalorder %s1754_s12, 2  ;;  %s1286_s14 = sand.u32 1, %s1742_s30  }
 0x404   : > { %s1287_s16 = scalar_lea.sflag [#allocation4], %s1286_s14 }
 0x405   : > { %p1485_p10 = pnand %p1496_p9, %p1859_p6 }
 0x407   : > { %p1486_p11 = pneg %p1485_p10 }
 0x409   : > { %1737 = dma.done.wait (%p1486_p11), %s1287_s16, 2048  }
 0x40a   : > { %1739 = vsyncadd (%p1486_p11), %s1287_s16, 4294965248  ;;  %s2302_s12 = sld [smem:[#allocation16_spill]]  ;;  %s2305_s30 = smov %s1746_s10 }
 0x40b   : > { %s2303_s17 = sld [smem:[#allocation15_spill]] }
 0x40c   : > { %s2304_s11 = sld [smem:[#allocation17_spill]] }
 0x410   : > { %p22_p12 = scmp.ge.s32.totalorder %s2302_s12, 4  }
 0x411   : > { %s2306_s10 = smov %s2303_s17 }
 0x412   :  { %24 = sbr.rel (!%p22_p12) target bundleno = 9 (0x9), region = 108 }
 0x417   :  { %1293 = vsyncpa [#allocation3], 1 }
 0x418   :  { %1295 = vsyncpa [#allocation3 + $0x1], 1 }
 0x419   :  { %1296 = vsyncpa [#allocation6], 1 }
 0x41a   :  { %1297 = vsyncpa [#allocation9], 1 }
 0x41b   :  { %1298 = vsyncpa [#allocation4], 1 }
 0x41c   :  { %1300 = vsyncpa [#allocation4 + $0x1], 1 }

</bundles_post_ra>
